<compile_context>
chip_gen: v7x
topology: tpu7x:2x2x1
jax: 0.10.0
libtpu: 0.0.40
codegen_flags: <defaults>
</compile_context>

<pallas_src>
import copy
import functools

import jax
import jax.numpy as jnp
from jax.experimental import pallas as pl
from jax.experimental.pallas import tpu as pltpu

LANE = 128      # feature-dim padding granularity (vreg lane width / MXU tile)
SUBLANE = 8     # f32 sublane granularity for the batch tile
MAX_TB = 512    # max batch-tile rows


def _round_up(n, m):
    return (n + m - 1) // m * m


# -----------------------------------------------------------------------------
# Pallas kernels
# -----------------------------------------------------------------------------
def _mlp_kernel(x_ref, w1_ref, b1_ref, w2_ref, b2_ref, o_ref):
    # bf16 MXU operands, f32 accumulation; bias + tanh in f32 (VPU/EUP filler).
    x = x_ref[...]
    h = jnp.dot(x, w1_ref[...], preferred_element_type=jnp.float32)
    h = jnp.tanh(h + b1_ref[...])
    y = jnp.dot(h.astype(w2_ref.dtype), w2_ref[...],
                preferred_element_type=jnp.float32)
    o_ref[...] = (y + b2_ref[...]).astype(o_ref.dtype)


def _mlp_both_kernel(x_ref,
                     w1o_ref, b1o_ref, w2o_ref, b2o_ref,
                     w1n_ref, b1n_ref, w2n_ref, b2n_ref,
                     oo_ref, on_ref):
    # Fused old/new policy evaluation: the x tile is loaded once for both.
    x = x_ref[...]

    ho = jnp.tanh(jnp.dot(x, w1o_ref[...], preferred_element_type=jnp.float32)
                  + b1o_ref[...])
    yo = jnp.dot(ho.astype(w2o_ref.dtype), w2o_ref[...],
                 preferred_element_type=jnp.float32) + b2o_ref[...]
    oo_ref[...] = yo.astype(oo_ref.dtype)

    hn = jnp.tanh(jnp.dot(x, w1n_ref[...], preferred_element_type=jnp.float32)
                  + b1n_ref[...])
    yn = jnp.dot(hn.astype(w2n_ref.dtype), w2n_ref[...],
                 preferred_element_type=jnp.float32) + b2n_ref[...]
    on_ref[...] = yn.astype(on_ref.dtype)


# -----------------------------------------------------------------------------
# Host-side plumbing: padding, specs, pallas_call
# -----------------------------------------------------------------------------
def _pad_params(params):
    """Zero-pad feature dims to 128-multiples; cast matmul operands to bf16."""
    w1, b1, w2, b2 = params["w1"], params["b1"], params["w2"], params["b2"]
    din, h = w1.shape
    dout = w2.shape[1]
    din_p, h_p, dout_p = (_round_up(din, LANE), _round_up(h, LANE),
                          _round_up(dout, LANE))
    w1p = jnp.zeros((din_p, h_p), jnp.bfloat16).at[:din, :h].set(
        w1.astype(jnp.bfloat16))
    w2p = jnp.zeros((h_p, dout_p), jnp.bfloat16).at[:h, :dout].set(
        w2.astype(jnp.bfloat16))
    b1p = jnp.zeros((1, h_p), jnp.float32).at[:, :h].set(
        b1.reshape(1, h).astype(jnp.float32))
    b2p = jnp.zeros((1, dout_p), jnp.float32).at[:, :dout].set(
        b2.reshape(1, dout).astype(jnp.float32))
    return (w1p, b1p, w2p, b2p), (din, h, dout)


def _padded_mlp_call(x, param_sets):
    """Run the fused MLP on padded operands.

    param_sets: tuple of 1 (single policy) or 2 (old, new) padded tuples.
    Returns padded (B_pad, Dout_pad) f32 output(s).
    """
    B, din = x.shape
    din_p = param_sets[0][0].shape[0]
    dout_p = param_sets[0][2].shape[1]

    tb = min(MAX_TB, _round_up(B, SUBLANE))
    b_pad = _round_up(B, tb)

    xp = jnp.zeros((b_pad, din_p), jnp.bfloat16).at[:B, :din].set(
        x.astype(jnp.bfloat16))

    x_spec = pl.BlockSpec((tb, din_p), lambda i: (i, 0))
    const_map = lambda i: (0, 0)   # weights DMA'd once, VMEM-resident

    in_specs = [x_spec]
    args = [xp]
    for (w1p, b1p, w2p, b2p) in param_sets:
        in_specs += [pl.BlockSpec(w1p.shape, const_map),
                     pl.BlockSpec(b1p.shape, const_map),
                     pl.BlockSpec(w2p.shape, const_map),
                     pl.BlockSpec(b2p.shape, const_map)]
        args += [w1p, b1p, w2p, b2p]

    n_out = len(param_sets)
    out_spec = pl.BlockSpec((tb, dout_p), lambda i: (i, 0))
    if n_out == 1:
        kernel = _mlp_kernel
        out_shape = jax.ShapeDtypeStruct((b_pad, dout_p), jnp.float32)
        out_specs = out_spec
    else:
        kernel = _mlp_both_kernel
        out_shape = [jax.ShapeDtypeStruct((b_pad, dout_p), jnp.float32)] * 2
        out_specs = [out_spec, out_spec]

    h_p = param_sets[0][0].shape[1]
    flops = n_out * 2 * b_pad * (din_p * h_p + h_p * dout_p)
    bytes_accessed = (xp.size * 2
                      + sum(sum(p.size * p.dtype.itemsize for p in ps)
                            for ps in param_sets)
                      + n_out * b_pad * dout_p * 4)

    return pl.pallas_call(
        kernel,
        out_shape=out_shape,
        grid_spec=pltpu.PrefetchScalarGridSpec(
            num_scalar_prefetch=0,
            grid=(b_pad // tb,),
            in_specs=in_specs,
            out_specs=out_specs,
        ),
        compiler_params=pltpu.CompilerParams(
            dimension_semantics=("parallel",),      # megacore on v7x
            vmem_limit_bytes=32 * 1024 * 1024,      # safe on v5e/v6e/v7x
        ),
        cost_estimate=pl.CostEstimate(
            flops=flops, transcendentals=n_out * b_pad * h_p,
            bytes_accessed=bytes_accessed),
    )(*args)


@functools.partial(jax.jit, static_argnames=("dout",))
def _forward_single_jit(x, w1p, b1p, w2p, b2p, *, dout):
    out = _padded_mlp_call(x, ((w1p, b1p, w2p, b2p),))
    return out[: x.shape[0], :dout]


@functools.partial(jax.jit, static_argnames=("dout",))
def _forward_both_jit(x, old_params, new_params, *, dout):
    o_old, o_new = _padded_mlp_call(x, (tuple(old_params), tuple(new_params)))
    B = x.shape[0]
    return o_old[:B, :dout], o_new[:B, :dout]


def mlp_forward(x, params):
    """Single-policy fused MLP forward on a (B, D_in) batch."""
    padded, (_, _, dout) = _pad_params(params)
    return _forward_single_jit(x, *padded, dout=dout)


# -----------------------------------------------------------------------------
# PPOWrapModel equivalent
# -----------------------------------------------------------------------------
def init_mlp_params(key, d_in, d_hidden, d_out, dtype=jnp.float32):
    k1, k2 = jax.random.split(key)
    lim1 = 1.0 / jnp.sqrt(d_in)
    lim2 = 1.0 / jnp.sqrt(d_hidden)
    return {
        "w1": jax.random.uniform(k1, (d_in, d_hidden), dtype, -lim1, lim1),
        "b1": jnp.zeros((1, d_hidden), dtype),
        "w2": jax.random.uniform(k2, (d_hidden, d_out), dtype, -lim2, lim2),
        "b2": jnp.zeros((1, d_out), dtype),
    }


class PPOWrapModel:
    """JAX/Pallas port of the PyTorch PPOWrapModel.

    Holds two parameter pytrees ("old" = deep copy of "new" at construction);
    forward(input, old) dispatches the Pallas MLP kernel on the chosen set.
    forward_both(input) fuses both policy evaluations into one kernel call
    (for the PPO ratio, x is read from HBM only once).
    """

    def __init__(self, params):
        self.new = params
        self.old = copy.deepcopy(jax.tree_util.tree_map(lambda p: p, params))
        self._new_padded, dims = _pad_params(self.new)
        self._old_padded, _ = _pad_params(self.old)
        self._dout = dims[2]

    def __call__(self, x, old=False):
        return self.forward(x, old=old)

    def forward(self, x, old=False):
        padded = self._old_padded if old else self._new_padded
        return _forward_single_jit(x, *padded, dout=self._dout)

    def forward_both(self, x):
        return _forward_both_jit(x, self._old_padded, self._new_padded,
                                 dout=self._dout)

    def parameters(self):
        return jax.tree_util.tree_leaves(self.new)

    def backup(self):
        # old.load_state_dict(new.state_dict())
        self.old = jax.tree_util.tree_map(lambda p: p, self.new)
        self._old_padded, _ = _pad_params(self.old)


# -----------------------------------------------------------------------------
# Demo
# -----------------------------------------------------------------------------
if __name__ == "__main__":
    key = jax.random.PRNGKey(0)
    kp, kx = jax.random.split(key)

    BATCH, D_IN, D_HIDDEN, D_OUT = 8, 32, 64, 8
    params = init_mlp_params(kp, D_IN, D_HIDDEN, D_OUT)
    model = PPOWrapModel(params)

    x = jax.random.normal(kx, (BATCH, D_IN), jnp.float32)

    out_new = model(x, old=False)
    out_old = model(x, old=True)
    both_old, both_new = model.forward_both(x)
    jax.block_until_ready(out_new)
    jax.block_until_ready(out_old)
    jax.block_until_ready(both_new)

    # f32 reference; bf16 MXU operands => loose-ish tolerance.
    ref = jnp.tanh(x @ params["w1"] + params["b1"]) @ params["w2"] + params["b2"]
    assert out_new.shape == (BATCH, D_OUT)
    assert jnp.allclose(out_new, ref, atol=2e-2, rtol=2e-2)
    # old is a deep copy of new at init -> identical outputs
    assert jnp.allclose(out_new, out_old, atol=1e-6, rtol=1e-6)
    # fused old/new call matches the separate single-policy calls
    assert jnp.allclose(both_new, out_new, atol=1e-6, rtol=1e-6)
    assert jnp.allclose(both_old, out_old, atol=1e-6, rtol=1e-6)

    # backup() makes old identical to new again
    model.backup()
    assert jnp.allclose(model(x, old=True), out_new, atol=1e-6, rtol=1e-6)

    print("KERNEL_OK")
</pallas_src>

<mosaic_0001>
module attributes {stable_mosaic.version = 11 : i64} {
  func.func @_mlp_kernel(%arg0: i32, %arg1: memref<8x128xbf16, #tpu.memory_space<vmem>>, %arg2: memref<128x128xbf16, #tpu.memory_space<vmem>>, %arg3: memref<1x128xf32, #tpu.memory_space<vmem>>, %arg4: memref<128x128xbf16, #tpu.memory_space<vmem>>, %arg5: memref<1x128xf32, #tpu.memory_space<vmem>>, %arg6: memref<8x128xf32, #tpu.memory_space<vmem>>) attributes {dimension_semantics = [#tpu.dimension_semantics<parallel>], iteration_bounds = array<i64: 1>, scalar_prefetch = 0 : i64, scratch_operands = 0 : i64, tpu.core_type = #tpu.core_type<tc>, window_params = [{transform_indices = @transform_0, window_bounds = array<i64: 8, 128>}, {pipeline_mode = #tpu.pipeline_mode<synchronous>, transform_indices = @transform_1, window_bounds = array<i64: 128, 128>}, {pipeline_mode = #tpu.pipeline_mode<synchronous>, transform_indices = @transform_2, window_bounds = array<i64: 1, 128>}, {pipeline_mode = #tpu.pipeline_mode<synchronous>, transform_indices = @transform_3, window_bounds = array<i64: 128, 128>}, {pipeline_mode = #tpu.pipeline_mode<synchronous>, transform_indices = @transform_4, window_bounds = array<i64: 1, 128>}, {transform_indices = @transform_5, window_bounds = array<i64: 8, 128>}]} {
    %c0 = arith.constant 0 : index
    %c0_0 = arith.constant 0 : index
    %0 = vector.load %arg1[%c0, %c0_0] : memref<8x128xbf16, #tpu.memory_space<vmem>>, vector<8x128xbf16>
    %c0_1 = arith.constant 0 : index
    %c0_2 = arith.constant 0 : index
    %1 = vector.load %arg2[%c0_1, %c0_2] : memref<128x128xbf16, #tpu.memory_space<vmem>>, vector<128x128xbf16>
    %cst = arith.constant dense<0.000000e+00> : vector<8x128xf32>
    %2 = tpu.matmul %0, %1, %cst {dimension_numbers = #tpu.dot_dimension_numbers<[1], [0], [0], [1], [0, 0, 1, 1], [], []>} : vector<8x128xbf16>, vector<128x128xbf16>, vector<8x128xf32> -> vector<8x128xf32>
    %c0_3 = arith.constant 0 : index
    %c0_4 = arith.constant 0 : index
    %3 = vector.load %arg3[%c0_3, %c0_4] : memref<1x128xf32, #tpu.memory_space<vmem>>, vector<1x128xf32>
    %4 = vector.broadcast %3 : vector<1x128xf32> to vector<8x128xf32>
    %5 = arith.addf %2, %4 : vector<8x128xf32>
    %6 = math.tanh %5 : vector<8x128xf32>
    %7 = arith.truncf %6 : vector<8x128xf32> to vector<8x128xbf16>
    %c0_5 = arith.constant 0 : index
    %c0_6 = arith.constant 0 : index
    %8 = vector.load %arg4[%c0_5, %c0_6] : memref<128x128xbf16, #tpu.memory_space<vmem>>, vector<128x128xbf16>
    %cst_7 = arith.constant dense<0.000000e+00> : vector<8x128xf32>
    %9 = tpu.matmul %7, %8, %cst_7 {dimension_numbers = #tpu.dot_dimension_numbers<[1], [0], [0], [1], [0, 0, 1, 1], [], []>} : vector<8x128xbf16>, vector<128x128xbf16>, vector<8x128xf32> -> vector<8x128xf32>
    %c0_8 = arith.constant 0 : index
    %c0_9 = arith.constant 0 : index
    %10 = vector.load %arg5[%c0_8, %c0_9] : memref<1x128xf32, #tpu.memory_space<vmem>>, vector<1x128xf32>
    %11 = vector.broadcast %10 : vector<1x128xf32> to vector<8x128xf32>
    %12 = arith.addf %9, %11 : vector<8x128xf32>
    %c0_10 = arith.constant 0 : index
    %c0_11 = arith.constant 0 : index
    %13 = vector.load %arg6[%c0_10, %c0_11] : memref<8x128xf32, #tpu.memory_space<vmem>>, vector<8x128xf32>
    tpu.vector_store %arg6[%c0_10, %c0_11], %12 {strides = array<i32>} : memref<8x128xf32, #tpu.memory_space<vmem>>, vector<8x128xf32>,
    return
  }
  func.func @transform_0(%arg0: i32) -> (i32, i32) {
    %c0_i32 = arith.constant 0 : i32
    %c0_i32_0 = arith.constant 0 : i32
    return %arg0, %c0_i32 : i32, i32
  }
  func.func @transform_1(%arg0: i32) -> (i32, i32) {
    %c0_i32 = arith.constant 0 : i32
    %c0_i32_0 = arith.constant 0 : i32
    %c0_i32_1 = arith.constant 0 : i32
    return %c0_i32, %c0_i32_0 : i32, i32
  }
  func.func @transform_2(%arg0: i32) -> (i32, i32) {
    %c0_i32 = arith.constant 0 : i32
    %c0_i32_0 = arith.constant 0 : i32
    %c0_i32_1 = arith.constant 0 : i32
    return %c0_i32, %c0_i32_0 : i32, i32
  }
  func.func @transform_3(%arg0: i32) -> (i32, i32) {
    %c0_i32 = arith.constant 0 : i32
    %c0_i32_0 = arith.constant 0 : i32
    %c0_i32_1 = arith.constant 0 : i32
    return %c0_i32, %c0_i32_0 : i32, i32
  }
  func.func @transform_4(%arg0: i32) -> (i32, i32) {
    %c0_i32 = arith.constant 0 : i32
    %c0_i32_0 = arith.constant 0 : i32
    %c0_i32_1 = arith.constant 0 : i32
    return %c0_i32, %c0_i32_0 : i32, i32
  }
  func.func @transform_5(%arg0: i32) -> (i32, i32) {
    %c0_i32 = arith.constant 0 : i32
    %c0_i32_0 = arith.constant 0 : i32
    return %arg0, %c0_i32 : i32, i32
  }
}

</mosaic_0001>

<bundles_post_ra>
// kernel: _forward_single_jit.1
= control target key start
LH: loop header
LB: loop body
LE: loop exit
PB: predicated region body
PF: predicated region fallthrough
CT: control target
= control target key end

     0   :  { %10 = vsyncpa [#allocation3], 0  ;;  %s547_s0 = inlined_call_operand.vmem [shape: bf16[8,128], index: 0, kind: input, shape index: {}]   ;;  %s548_s1 = inlined_call_operand.hbm [shape: bf16[128,128], index: 1, kind: input, shape index: {}]   ;;  %s549_s2 = inlined_call_operand.vmem [shape: f32[1,128], index: 2, kind: input, shape index: {}]   ;;  %s550_s3 = inlined_call_operand.hbm [shape: bf16[128,128], index: 3, kind: input, shape index: {}]   ;;  %s551_s4 = inlined_call_operand.vmem [shape: f32[1,128], index: 4, kind: input, shape index: {}]   ;;  %s552_s5 = inlined_call_operand.hbm [shape: f32[8,128], index: 5, kind: output, shape index: {}]  }
   0x1   :  { %11 = vsyncpa [#allocation6], 0 }
   0x2   :  { %12 = vsyncpa [#allocation4], 0  ;;  %s465_s18 = smov [#allocation2]   ;;  %s393_s22 = scalar_lea.hbm %s548_s1, 1024 }
   0x3   :  { %s20_s19 = sshll.u32 %s465_s18, 4  ;;  %p394_p0 = scmp.ne.s32.totalorder %s548_s1, %s393_s22  ;;  %s21_s19 = int_to_ptr.vmem [resolvable:$true] %s20_s19 }
   0x4   :  { %p397_p1 = scmp.lt.u32.totalorder %s393_s22, %s548_s1 }
   0x6   :  { %p399_p2 = pnand %p397_p1, %p394_p0 }
   0x8   :  { %402 = shalt.err (!%p399_p2)
}
   0x9   :  { %s403_s27 = scalar_lea.vmem %s21_s19, 1024  ;;  %p408_p4 = scmp.lt.s32.totalorder %s21_s19, %s21_s19 }
   0xa   :  { %p404_p3 = scmp.ne.s32.totalorder %s21_s19, %s403_s27  ;;  %p409_p5 = scmp.lt.s32.totalorder %s403_s27, %s403_s27 }
   0xc   :  { %p410_p6 = por %p409_p5, %p408_p4 }
   0xe   :  { %p411_p7 = pnand %p410_p6, %p404_p3 }
  0x10   :  { %414 = shalt.err (!%p411_p7)
}
  0x11   :  { %s466_s28 = smov 64   ;;  %s467_s29 = smov 4  }
  0x12   :  { %26 = dma.hbm_to_vmem [thread:$0]  %s548_s1, 1024, %s21_s19, [#allocation3], %s466_s28, %s466_s28, %s467_s29  }
  0x13   :  { %s468_s7 = smov [#allocation5]   ;;  %s415_s11 = scalar_lea.hbm %s550_s3, 1024 }
  0x14   :  { %s34_s8 = sshll.u32 %s468_s7, 4  ;;  %p416_p8 = scmp.ne.s32.totalorder %s550_s3, %s415_s11  ;;  %s35_s8 = int_to_ptr.vmem [resolvable:$true] %s34_s8 }
  0x15   :  { %p419_p9 = scmp.lt.u32.totalorder %s415_s11, %s550_s3 }
  0x17   :  { %p421_p10 = pnand %p419_p9, %p416_p8 }
  0x19   :  { %424 = shalt.err (!%p421_p10)
}
  0x1a   :  { %s425_s16 = scalar_lea.vmem %s35_s8, 1024  ;;  %p430_p12 = scmp.lt.s32.totalorder %s35_s8, %s35_s8 }
  0x1b   :  { %p426_p11 = scmp.ne.s32.totalorder %s35_s8, %s425_s16  ;;  %p431_p13 = scmp.lt.s32.totalorder %s425_s16, %s425_s16 }
  0x1d   :  { %p432_p0 = por %p431_p13, %p430_p12 }
  0x1f   :  { %p433_p1 = pnand %p432_p0, %p426_p11 }
  0x21   :  { %436 = shalt.err (!%p433_p1)
}
  0x22   :  { %40 = dma.hbm_to_vmem [thread:$0]  %s550_s3, 1024, %s35_s8, [#allocation6], %s466_s28, %s466_s28, %s467_s29  }
  0x23   :  { %459 = dma.done.wait [#allocation3], 1024  }
  0x24   :  { %460 = vsyncadd [#allocation3], 4294966272 }
  0x25   :  { %461 = dma.done.wait [#allocation6], 1024  }
  0x26   :  { %462 = vsyncadd [#allocation6], 4294966272  ;;  %v469_v0 = vmov 0.0   ;;  %vm470_vm0 = vmmov 0   ;;  %v375_v1 = vld [vmem:[#allocation2] sm:$0xff]   ;;  %v376_v2 = vld [vmem:[#allocation2 + $0x8] sm:$0xff]  }
  0x27   :  { %328 = vmatprep.subr.bf16.mxu0 %v469_v0  ;;  %344 = vmatprep.mubr.msk.bf16.mxu0 %vm470_vm0, %v469_v0  ;;  %v377_v3 = vld [vmem:[#allocation2 + $0x10] sm:$0xff]   ;;  %v383_v4 = vld [vmem:[#allocation5] sm:$0xff]   ;;  %v378_v5 = vld [vmem:[#allocation2 + $0x18] sm:$0xff]   ;;  %s471_s22 = smov [#allocation7]  }
  0x28   :  { %348 = vmatprep.subr.bf16.mxu1 %v469_v0  ;;  %364 = vmatprep.mubr.msk.bf16.mxu1 %vm470_vm0, %v469_v0  ;;  %v384_v6 = vld [vmem:[#allocation5 + $0x8] sm:$0xff]   ;;  %v379_v7 = vld [vmem:[#allocation2 + $0x20] sm:$0xff]   ;;  %v385_v8 = vld [vmem:[#allocation5 + $0x10] sm:$0xff]   ;;  %s282_s23 = sshll.u32 %s471_s22, 4  ;;  %s283_s23 = int_to_ptr.vmem [resolvable:$true] %s282_s23 }
  0x29   :  { %329 = vmatpush3.bf16.msra.mxu0 %v375_v1  ;;  %349 = vmatpush3.bf16.msra.mxu1 %v383_v4  ;;  %v380_v9 = vld [vmem:[#allocation2 + $0x28] sm:$0xff]   ;;  %v386_v10 = vld [vmem:[#allocation5 + $0x18] sm:$0xff]   ;;  %v381_v11 = vld [vmem:[#allocation2 + $0x30] sm:$0xff]   ;;  %p442_p3 = scmp.lt.s32.totalorder %s283_s23, %s283_s23 }
  0x2a   :  { %330 = vmatprep.subr.bf16.mxu0 %v469_v0  ;;  %350 = vmatprep.subr.bf16.mxu1 %v469_v0  ;;  %v382_v12 = vld [vmem:[#allocation2 + $0x38] sm:$0xff]   ;;  %v50_v13 = vld [vmem:[%s547_s0] sm:$0xf]  ;;  %v388_v15 = vld [vmem:[#allocation5 + $0x28] sm:$0xff]  }
  0x2b   :  { %v387_v14 = vld [vmem:[#allocation5 + $0x20] sm:$0xff]   ;;  %v389_v16 = vld [vmem:[#allocation5 + $0x30] sm:$0xff]   ;;  %v390_v17 = vld [vmem:[#allocation5 + $0x38] sm:$0xff]  }
  0x2c   :  { %v292_v18 = vld [vmem:[%s549_s2] ss:$0 sm:$0xff]  ;;  %s437_s2 = scalar_lea.vmem %s283_s23, 128 }
  0x2d   :  { %331 = vmatpush3.bf16.msra.mxu0 %v376_v2  ;;  %351 = vmatpush3.bf16.msra.mxu1 %v384_v6  ;;  %v301_v26 = vld [vmem:[%s551_s4] ss:$0 sm:$0xff]  ;;  %p438_p2 = scmp.ne.s32.totalorder %s283_s23, %s437_s2  ;;  %p443_p4 = scmp.lt.s32.totalorder %s437_s2, %s437_s2 }
  0x2e   :  { %332 = vmatprep.subr.bf16.mxu0 %v469_v0  ;;  %352 = vmatprep.subr.bf16.mxu1 %v469_v0 }
  0x2f   :  { %p444_p5 = por %p443_p4, %p442_p3 }
  0x31   :  { %333 = vmatpush3.bf16.msra.mxu0 %v377_v3  ;;  %353 = vmatpush3.bf16.msra.mxu1 %v385_v8  ;;  %p445_p6 = pnand %p444_p5, %p438_p2 }
  0x32   :  { %334 = vmatprep.subr.bf16.mxu0 %v469_v0  ;;  %354 = vmatprep.subr.bf16.mxu1 %v469_v0 }
  0x35   :  { %335 = vmatpush3.bf16.msra.mxu0 %v378_v5  ;;  %355 = vmatpush3.bf16.msra.mxu1 %v386_v10 }
  0x36   :  { %336 = vmatprep.subr.bf16.mxu0 %v469_v0  ;;  %356 = vmatprep.subr.bf16.mxu1 %v469_v0 }
  0x39   :  { %337 = vmatpush3.bf16.msra.mxu0 %v379_v7  ;;  %357 = vmatpush3.bf16.msra.mxu1 %v387_v14 }
  0x3a   :  { %338 = vmatprep.subr.bf16.mxu0 %v469_v0  ;;  %358 = vmatprep.subr.bf16.mxu1 %v469_v0 }
  0x3d   :  { %339 = vmatpush3.bf16.msra.mxu0 %v380_v9  ;;  %359 = vmatpush3.bf16.msra.mxu1 %v388_v15 }
  0x3e   :  { %340 = vmatprep.subr.bf16.mxu0 %v469_v0  ;;  %360 = vmatprep.subr.bf16.mxu1 %v469_v0 }
  0x41   :  { %341 = vmatpush3.bf16.msra.mxu0 %v381_v11  ;;  %361 = vmatpush3.bf16.msra.mxu1 %v389_v16 }
  0x42   :  { %342 = vmatprep.subr.bf16.mxu0 %v469_v0  ;;  %362 = vmatprep.subr.bf16.mxu1 %v469_v0 }
  0x45   :  { %343 = vmatpush3.bf16.msra.mxu0 %v382_v12  ;;  %363 = vmatpush3.bf16.msra.mxu1 %v390_v17 }
  0x48   :  { %345 = vmatmul.mubr.bf16.vlgmr.msra.gmra.mrb[0].mxu0 %v50_v13 }
 0x11b   :  { %v156_v19 = vpop.f32.mrb[0].mxu0 }
 0x11c   :  { %v157_v20 = vadd.f32 %v292_v18, %v156_v19  ;;  %v346_v21 = vpop.f32.mrb[1].mxu0 }
 0x11d   :  { %v159_v22 = vpop.f32.mrb[2].mxu0 }
 0x11e   :  { %391 = vtanh.f32 %v157_v20  ;;  %v347_v23 = vpop.f32.mrb[3].mxu0 }
 0x128   :  { %v392_v24 = vpop.eup %391 }
 0x129   :  { %v163_v25 = vpack.c.bf16 %v392_v24, %v392_v24 }
 0x12b   :  { %365 = vmatmul.mubr.bf16.vlgmr.msra.gmra.mrb[0].mxu1 %v163_v25 }
 0x1fe   :  { %v269_v27 = vpop.f32.mrb[0].mxu1 }
 0x1ff   :  { %v270_v28 = vadd.f32 %v301_v26, %v269_v27  ;;  %v366_v29 = vpop.f32.mrb[1].mxu1 }
 0x200   :  { %v272_v30 = vpop.f32.mrb[2].mxu1 }
 0x201   :  { %275 = vst [vmem:[#allocation7] sm:$0xff] %v270_v28  ;;  %v367_v31 = vpop.f32.mrb[3].mxu1 }
 0x202   :  { %448 = shalt.err (!%p445_p6)
}
 0x203   :  { %s449_s4 = scalar_lea.hbm %s552_s5, 128 }
 0x204   :  { %p450_p7 = scmp.ne.s32.totalorder %s552_s5, %s449_s4  ;;  %p453_p8 = scmp.lt.u32.totalorder %s449_s4, %s552_s5 }
 0x206   :  { %p455_p9 = pnand %p453_p8, %p450_p7 }
 0x208   :  { %458 = shalt.err (!%p455_p9)
}
 0x209   :  { %285 = dma.vmem_to_hbm [thread:$0]  %s283_s23, 128, %s552_s5, [#allocation4]  }
 0x20a   :  { %463 = dma.done.wait [#allocation4], 128  }
 0x20b   :  { %464 = vsyncadd [#allocation4], 4294967168 }
 0x20c   :  { %289 = vsyncpa [#allocation3], 1 }
 0x20d   :  { %290 = vsyncpa [#allocation6], 1 }
 0x20e   :  { %291 = vsyncpa [#allocation4], 1 }

</bundles_post_ra>
